<compile_context>
chip_gen: v7x
topology: tpu7x:2x2x1
jax: 0.10.0
libtpu: 0.0.40
codegen_flags: <defaults>
</compile_context>

<pallas_src>
import jax
import jax.numpy as jnp
from jax.experimental import pallas as pl
from jax.experimental.pallas import tpu as pltpu

# TODO(synk): the original module reads a global `eps`; fixed deterministically here.
EPS = 1e-8


def kld(P, Q):
    """KLD.forward(P, Q) -> scalar float32 (mean over batch of per-sample KL)."""
    B, C, H, W = P.shape
    D = C * H * W
    p2 = P.reshape(B, D)
    q2 = Q.reshape(B, D)

    # ---- generation-aware tiling -------------------------------------------
    try:
        vmem_cap = pltpu.get_tpu_info().vmem_capacity_bytes
    except Exception:
        vmem_cap = 64 * 1024 * 1024          # conservative (v7x per-TC) fallback
    big_vmem = vmem_cap >= 100 * 1024 * 1024

    if big_vmem:                              # v5e / v6e: 128 MiB VMEM, 1 TC
        max_tile_elems = 2 * 1024 * 1024      # ~8 MiB f32 per input tile
        tb_cap = 1024
        vmem_limit = 96 * 1024 * 1024
    else:                                     # v7x-like: 64 MiB per-TC VMEM, 2 TCs
        max_tile_elems = 768 * 1024           # ~3 MiB f32 per input tile
        tb_cap = 512
        vmem_limit = 44 * 1024 * 1024

    tb = (max_tile_elems // max(D, 1)) // 8 * 8
    tb = max(8, min(tb, tb_cap))
    tb = min(tb, pl.cdiv(B, 8) * 8)           # don't exceed the (padded) batch
    if (not big_vmem) and B > 8:
        # Guarantee >= 2 grid blocks so both v7x TensorCores get work.
        tb = min(tb, max(8, pl.cdiv(B, 16) * 8))

    num_blocks = pl.cdiv(B, tb)
    needs_mask = (num_blocks * tb != B)       # ragged tail -> mask in-kernel
    reduce_lanes = (D % 128 == 0)
    out_d = 128 if reduce_lanes else D

    def kernel(p_ref, q_ref, o_ref):
        p = p_ref[...].astype(jnp.float32)
        q = q_ref[...].astype(jnp.float32)

        if needs_mask:
            # Zero out-of-range rows BEFORE any arithmetic so garbage from the
            # ragged tail block cannot propagate; zero rows contribute exactly
            # 0 to the KL sum (0 * log(eps) == 0).
            row = (jax.lax.broadcasted_iota(jnp.int32, (tb, 1), 0)
                   + pl.program_id(0) * tb)
            valid = row < B
            p = jnp.where(valid, p, 0.0)
            q = jnp.where(valid, q, 0.0)

        # Per-row normalization, hoisted to per-row reciprocals.
        inv_sp = 1.0 / (jnp.sum(p, axis=1, keepdims=True) + EPS)   # (tb, 1)
        inv_sq = 1.0 / (jnp.sum(q, axis=1, keepdims=True) + EPS)   # (tb, 1)
        pn = p * inv_sp
        qn = q * inv_sq

        # kl_ij = P_ij * log(P_ij / (Q_ij + eps) + eps); inner divide kept exact.
        kl = pn * jnp.log(pn / (qn + EPS) + EPS)

        # (tb, D) -> (tb//8, 8, D) is a pure reinterpretation of the vreg
        # tiling; the leading-axis sum is plain VALU vreg adds (no XLU).
        kl8 = jnp.sum(kl.reshape(tb // 8, 8, D), axis=0)           # (8, D)

        if reduce_lanes:
            # Lane-chunk reduce to a single (8,128) vreg with static,
            # lane-aligned slices + VALU adds.
            acc = kl8[:, 0:128]
            for c in range(1, D // 128):
                acc = acc + kl8[:, c * 128:(c + 1) * 128]
        else:
            acc = kl8                                              # (8, D)

        o_ref[...] = acc.reshape(o_ref.shape)

    partials = pl.pallas_call(
        kernel,
        out_shape=jax.ShapeDtypeStruct((num_blocks, 8, out_d), jnp.float32),
        grid_spec=pltpu.PrefetchScalarGridSpec(
            num_scalar_prefetch=0,
            grid=(num_blocks,),
            in_specs=[
                pl.BlockSpec((tb, D), lambda i: (i, 0)),
                pl.BlockSpec((tb, D), lambda i: (i, 0)),
            ],
            out_specs=pl.BlockSpec((1, 8, out_d), lambda i: (i, 0, 0)),
        ),
        compiler_params=pltpu.CompilerParams(
            dimension_semantics=("parallel",),   # both TCs on v7x
            vmem_limit_bytes=vmem_limit,
        ),
    )(p2, q2)

    # Tiny final reduction over per-block (8, out_d) partials, then mean over B.
    return jnp.sum(partials) / B


def _kld_ref(P, Q):
    """Pure-JAX reference mirroring the PyTorch forward."""
    Pn = P / (jnp.sum(P, axis=(1, 2, 3), keepdims=True) + EPS)
    Qn = Q / (jnp.sum(Q, axis=(1, 2, 3), keepdims=True) + EPS)
    kl = Pn * jnp.log(Pn / (Qn + EPS) + EPS)
    kl = jnp.sum(kl, axis=(1, 2, 3))
    return jnp.mean(kl, axis=0)


if __name__ == "__main__":
    key = jax.random.PRNGKey(0)

    # Case 1: small canonical shape (B % 8 != 0 -> in-kernel row masking).
    kp, kq, key = jax.random.split(key, 3)
    B, C, H, W = 2, 4, 16, 16
    P = jax.random.uniform(kp, (B, C, H, W), dtype=jnp.float32) + 0.1
    Q = jax.random.uniform(kq, (B, C, H, W), dtype=jnp.float32) + 0.1
    result = jax.block_until_ready(kld(P, Q))
    ref = _kld_ref(P, Q)
    assert jnp.allclose(result, ref, rtol=1e-5, atol=1e-6), (result, ref)

    # Case 2: ragged batch with a different D (exercises mask + multi-block path).
    kp, kq, key = jax.random.split(key, 3)
    B2, C2, H2, W2 = 13, 3, 16, 16
    P2 = jax.random.uniform(kp, (B2, C2, H2, W2), dtype=jnp.float32) + 0.1
    Q2 = jax.random.uniform(kq, (B2, C2, H2, W2), dtype=jnp.float32) + 0.1
    result2 = jax.block_until_ready(kld(P2, Q2))
    ref2 = _kld_ref(P2, Q2)
    assert jnp.allclose(result2, ref2, rtol=1e-5, atol=1e-6), (result2, ref2)

    print("KERNEL_OK")
</pallas_src>

<mosaic_0001>
module attributes {stable_mosaic.version = 11 : i64} {
  func.func @kernel(%arg0: i32, %arg1: memref<8x1024xf32, #tpu.memory_space<vmem>>, %arg2: memref<8x1024xf32, #tpu.memory_space<vmem>>, %arg3: memref<1x8x128xf32, #tpu.memory_space<vmem>>) attributes {dimension_semantics = [#tpu.dimension_semantics<parallel>], iteration_bounds = array<i64: 1>, scalar_prefetch = 0 : i64, scratch_operands = 0 : i64, tpu.core_type = #tpu.core_type<tc>, window_params = [{transform_indices = @transform_0, window_bounds = array<i64: 8, 1024>}, {transform_indices = @transform_1, window_bounds = array<i64: 8, 1024>}, {transform_indices = @transform_2, window_bounds = array<i64: 1, 8, 128>}]} {
    %c0 = arith.constant 0 : index
    %c0_0 = arith.constant 0 : index
    %0 = vector.load %arg1[%c0, %c0_0] : memref<8x1024xf32, #tpu.memory_space<vmem>>, vector<8x1024xf32>
    %c0_1 = arith.constant 0 : index
    %c0_2 = arith.constant 0 : index
    %1 = vector.load %arg2[%c0_1, %c0_2] : memref<8x1024xf32, #tpu.memory_space<vmem>>, vector<8x1024xf32>
    %2 = tpu.iota {dimensions = array<i32: 0>} : vector<8x1xi32>
    %c8_i32 = arith.constant 8 : i32
    %3 = arith.muli %arg0, %c8_i32 : i32
    %4 = vector.broadcast %3 : i32 to vector<8x1xi32>
    %5 = arith.addi %2, %4 : vector<8x1xi32>
    %c2_i32 = arith.constant 2 : i32
    %6 = vector.broadcast %c2_i32 : i32 to vector<8x1xi32>
    %7 = arith.cmpi slt, %5, %6 : vector<8x1xi32>
    %cst = arith.constant 0.000000e+00 : f32
    %8 = vector.shape_cast %7 : vector<8x1xi1> to vector<8x1xi1>
    %9 = vector.broadcast %8 : vector<8x1xi1> to vector<8x1024xi1>
    %10 = vector.broadcast %cst : f32 to vector<8x1024xf32>
    %11 = arith.select %9, %0, %10 : vector<8x1024xi1>, vector<8x1024xf32>
    %cst_3 = arith.constant 0.000000e+00 : f32
    %12 = vector.shape_cast %7 : vector<8x1xi1> to vector<8x1xi1>
    %13 = vector.broadcast %12 : vector<8x1xi1> to vector<8x1024xi1>
    %14 = vector.broadcast %cst_3 : f32 to vector<8x1024xf32>
    %15 = arith.select %13, %1, %14 : vector<8x1024xi1>, vector<8x1024xf32>
    %cst_4 = arith.constant dense<0.000000e+00> : vector<8xf32>
    %16 = vector.multi_reduction <add>, %11, %cst_4 [1] : vector<8x1024xf32> to vector<8xf32>
    %17 = vector.shape_cast %16 : vector<8xf32> to vector<8x1xf32>
    %cst_5 = arith.constant 9.99999993E-9 : f32
    %18 = vector.broadcast %cst_5 : f32 to vector<8x1xf32>
    %19 = arith.addf %17, %18 : vector<8x1xf32>
    %cst_6 = arith.constant 1.000000e+00 : f32
    %20 = vector.broadcast %cst_6 : f32 to vector<8x1xf32>
    %21 = arith.divf %20, %19 : vector<8x1xf32>
    %cst_7 = arith.constant dense<0.000000e+00> : vector<8xf32>
    %22 = vector.multi_reduction <add>, %15, %cst_7 [1] : vector<8x1024xf32> to vector<8xf32>
    %23 = vector.shape_cast %22 : vector<8xf32> to vector<8x1xf32>
    %cst_8 = arith.constant 9.99999993E-9 : f32
    %24 = vector.broadcast %cst_8 : f32 to vector<8x1xf32>
    %25 = arith.addf %23, %24 : vector<8x1xf32>
    %cst_9 = arith.constant 1.000000e+00 : f32
    %26 = vector.broadcast %cst_9 : f32 to vector<8x1xf32>
    %27 = arith.divf %26, %25 : vector<8x1xf32>
    %28 = vector.broadcast %21 : vector<8x1xf32> to vector<8x1024xf32>
    %29 = arith.mulf %11, %28 : vector<8x1024xf32>
    %30 = vector.broadcast %27 : vector<8x1xf32> to vector<8x1024xf32>
    %31 = arith.mulf %15, %30 : vector<8x1024xf32>
    %cst_10 = arith.constant 9.99999993E-9 : f32
    %32 = vector.broadcast %cst_10 : f32 to vector<8x1024xf32>
    %33 = arith.addf %31, %32 : vector<8x1024xf32>
    %34 = arith.divf %29, %33 : vector<8x1024xf32>
    %cst_11 = arith.constant 9.99999993E-9 : f32
    %35 = vector.broadcast %cst_11 : f32 to vector<8x1024xf32>
    %36 = arith.addf %34, %35 : vector<8x1024xf32>
    %37 = math.log %36 : vector<8x1024xf32>
    %38 = arith.mulf %29, %37 : vector<8x1024xf32>
    %39 = vector.shape_cast %38 : vector<8x1024xf32> to vector<1x8x1024xf32>
    %cst_12 = arith.constant dense<0.000000e+00> : vector<8x1024xf32>
    %40 = vector.multi_reduction <add>, %39, %cst_12 [0] : vector<1x8x1024xf32> to vector<8x1024xf32>
    %41 = vector.extract_strided_slice %40 {offsets = [0, 0], sizes = [8, 128], strides = [1, 1]} : vector<8x1024xf32> to vector<8x128xf32>
    %42 = vector.extract_strided_slice %40 {offsets = [0, 128], sizes = [8, 128], strides = [1, 1]} : vector<8x1024xf32> to vector<8x128xf32>
    %43 = arith.addf %41, %42 : vector<8x128xf32>
    %44 = vector.extract_strided_slice %40 {offsets = [0, 256], sizes = [8, 128], strides = [1, 1]} : vector<8x1024xf32> to vector<8x128xf32>
    %45 = arith.addf %43, %44 : vector<8x128xf32>
    %46 = vector.extract_strided_slice %40 {offsets = [0, 384], sizes = [8, 128], strides = [1, 1]} : vector<8x1024xf32> to vector<8x128xf32>
    %47 = arith.addf %45, %46 : vector<8x128xf32>
    %48 = vector.extract_strided_slice %40 {offsets = [0, 512], sizes = [8, 128], strides = [1, 1]} : vector<8x1024xf32> to vector<8x128xf32>
    %49 = arith.addf %47, %48 : vector<8x128xf32>
    %50 = vector.extract_strided_slice %40 {offsets = [0, 640], sizes = [8, 128], strides = [1, 1]} : vector<8x1024xf32> to vector<8x128xf32>
    %51 = arith.addf %49, %50 : vector<8x128xf32>
    %52 = vector.extract_strided_slice %40 {offsets = [0, 768], sizes = [8, 128], strides = [1, 1]} : vector<8x1024xf32> to vector<8x128xf32>
    %53 = arith.addf %51, %52 : vector<8x128xf32>
    %54 = vector.extract_strided_slice %40 {offsets = [0, 896], sizes = [8, 128], strides = [1, 1]} : vector<8x1024xf32> to vector<8x128xf32>
    %55 = arith.addf %53, %54 : vector<8x128xf32>
    %56 = vector.shape_cast %55 : vector<8x128xf32> to vector<1x8x128xf32>
    %c0_13 = arith.constant 0 : index
    %c0_14 = arith.constant 0 : index
    %c0_15 = arith.constant 0 : index
    %57 = vector.load %arg3[%c0_13, %c0_14, %c0_15] : memref<1x8x128xf32, #tpu.memory_space<vmem>>, vector<1x8x128xf32>
    tpu.vector_store %arg3[%c0_13, %c0_14, %c0_15], %56 {strides = array<i32>} : memref<1x8x128xf32, #tpu.memory_space<vmem>>, vector<1x8x128xf32>,
    return
  }
  func.func @transform_0(%arg0: i32) -> (i32, i32) {
    %c0_i32 = arith.constant 0 : i32
    %c0_i32_0 = arith.constant 0 : i32
    return %arg0, %c0_i32 : i32, i32
  }
  func.func @transform_1(%arg0: i32) -> (i32, i32) {
    %c0_i32 = arith.constant 0 : i32
    %c0_i32_0 = arith.constant 0 : i32
    return %arg0, %c0_i32 : i32, i32
  }
  func.func @transform_2(%arg0: i32) -> (i32, i32, i32) {
    %c0_i32 = arith.constant 0 : i32
    %c0_i32_0 = arith.constant 0 : i32
    %c0_i32_1 = arith.constant 0 : i32
    return %arg0, %c0_i32, %c0_i32_0 : i32, i32, i32
  }
}

</mosaic_0001>

<bundles_post_ra>
// kernel: tpu_custom_call.1
= control target key start
LH: loop header
LB: loop body
LE: loop exit
PB: predicated region body
PF: predicated region fallthrough
CT: control target
= control target key end

     0   :  { %7 = vsyncpa [#allocation3], 0  ;;  %s623_s0 = inlined_call_operand.hbm [shape: f32[2,1024], index: 0, kind: input, shape index: {}]   ;;  %s624_s1 = inlined_call_operand.hbm [shape: f32[2,1024], index: 1, kind: input, shape index: {}]   ;;  %s625_s2 = inlined_call_operand.hbm [shape: f32[1,8,128], index: 2, kind: output, shape index: {}]  }
   0x1   :  { %8 = vsyncpa [#allocation6], 0 }
   0x2   :  { %9 = vsyncpa [#allocation4], 0 }
   0x3   :  { %14 = vsyncadd [#allocation3], 768  ;;  %s522_s9 = smov [#allocation2]   ;;  %s450_s13 = scalar_lea.hbm %s623_s0, 256 }
   0x4   :  { %s15_s10 = sshll.u32 %s522_s9, 4  ;;  %p451_p0 = scmp.ne.s32.totalorder %s623_s0, %s450_s13  ;;  %s16_s10 = int_to_ptr.vmem [resolvable:$true] %s15_s10 }
   0x5   :  { %p454_p1 = scmp.lt.u32.totalorder %s450_s13, %s623_s0 }
   0x7   :  { %p456_p2 = pnand %p454_p1, %p451_p0 }
   0x9   :  { %459 = shalt.err (!%p456_p2)
}
   0xa   :  { %s460_s18 = scalar_lea.vmem %s16_s10, 256  ;;  %s464_s19 = scalar_lea.vmem %s16_s10, 1024 }
   0xb   :  { %p461_p3 = scmp.ne.s32.totalorder %s16_s10, %s460_s18  ;;  %p465_p4 = scmp.lt.s32.totalorder %s16_s10, %s16_s10 }
   0xc   :  { %p466_p5 = scmp.lt.s32.totalorder %s464_s19, %s460_s18 }
   0xe   :  { %p467_p6 = por %p466_p5, %p465_p4 }
  0x10   :  { %p468_p7 = pnand %p467_p6, %p461_p3 }
  0x12   :  { %471 = shalt.err (!%p468_p7)
}
  0x13   :  { %s523_s20 = smov 256   ;;  %s524_s21 = smov 16  }
  0x14   :  { %21 = dma.hbm_to_vmem [thread:$0]  %s623_s0, 256, %s16_s10, [#allocation3], %s523_s20, %s523_s20, %s524_s21  }
  0x15   :  { %26 = vsyncadd [#allocation6], 768  ;;  %s525_s24 = smov [#allocation5]   ;;  %s472_s28 = scalar_lea.hbm %s624_s1, 256 }
  0x16   :  { %s27_s25 = sshll.u32 %s525_s24, 4  ;;  %p473_p8 = scmp.ne.s32.totalorder %s624_s1, %s472_s28  ;;  %s28_s25 = int_to_ptr.vmem [resolvable:$true] %s27_s25 }
  0x17   :  { %p476_p9 = scmp.lt.u32.totalorder %s472_s28, %s624_s1 }
  0x19   :  { %p478_p10 = pnand %p476_p9, %p473_p8 }
  0x1b   :  { %481 = shalt.err (!%p478_p10)
}
  0x1c   :  { %s482_s5 = scalar_lea.vmem %s28_s25, 256  ;;  %s486_s0 = scalar_lea.vmem %s28_s25, 1024 }
  0x1d   :  { %p483_p11 = scmp.ne.s32.totalorder %s28_s25, %s482_s5  ;;  %p487_p12 = scmp.lt.s32.totalorder %s28_s25, %s28_s25 }
  0x1e   :  { %p488_p13 = scmp.lt.s32.totalorder %s486_s0, %s482_s5 }
  0x20   :  { %p489_p0 = por %p488_p13, %p487_p12 }
  0x22   :  { %p490_p1 = pnand %p489_p0, %p483_p11 }
  0x24   :  { %493 = shalt.err (!%p490_p1)
}
  0x25   :  { %33 = dma.hbm_to_vmem [thread:$0]  %s624_s1, 256, %s28_s25, [#allocation6], %s523_s20, %s523_s20, %s524_s21  }
  0x26   :  { %516 = dma.done.wait [#allocation3], 1024  }
  0x27   :  { %517 = vsyncadd [#allocation3], 4294966272 }
  0x28   :  { %518 = dma.done.wait [#allocation6], 1024  }
  0x29   :  { %519 = vsyncadd [#allocation6], 4294966272  ;;  %v56_v0 = vlaneseq  ;;  %v526_v1 = vmov 1983009808   ;;  %v390_v6 = vld [vmem:[#allocation5] ss:$16 sps:$4 sm:$0xff]  }
  0x2a   :  { %v77_v2 = vunpack.c.l.s4 %v526_v1  ;;  %v392_v7 = vld [vmem:[#allocation5 + $0x4] ss:$16 sps:$4 sm:$0xff]   ;;  %v393_v8 = vld [vmem:[#allocation5 + $0x20] ss:$16 sps:$4 sm:$0xff]   ;;  %v396_v11 = vld [vmem:[#allocation5 + $0x8] ss:$16 sps:$4 sm:$0xff]  }
  0x2b   :  { %v567_v3 = vshrl.u32 %v56_v0, 7  ;;  %v395_v9 = vld [vmem:[#allocation5 + $0x24] ss:$16 sps:$4 sm:$0xff]   ;;  %v398_v12 = vld [vmem:[#allocation5 + $0xc] ss:$16 sps:$4 sm:$0xff]   ;;  %s527_s1 = smov [#allocation7]  }
  0x2c   :  { %v78_v4 = vunpack.c.0.s8 %v77_v2  ;;  %v399_v13 = vld [vmem:[#allocation5 + $0x28] ss:$16 sps:$4 sm:$0xff]   ;;  %v401_v17 = vld [vmem:[#allocation5 + $0x2c] ss:$16 sps:$4 sm:$0xff]   ;;  %v402_v24 = vld [vmem:[#allocation2] ss:$16 sps:$4 sm:$0xff]  }
  0x2d   :  { %vm61_vm0 = vcmp.lt.s32.totalorder %v567_v3, 2  ;;  %v404_v25 = vld [vmem:[#allocation2 + $0x4] ss:$16 sps:$4 sm:$0xff]   ;;  %v405_v26 = vld [vmem:[#allocation2 + $0x20] ss:$16 sps:$4 sm:$0xff]   ;;  %s374_s8 = sshll.u32 %s527_s1, 4  ;;  %s375_s8 = int_to_ptr.vmem [resolvable:$true] %s374_s8 }
  0x2e   :  { %v81_v5 = vsub.s32 %v78_v4, %v567_v3  ;;  %v407_v31 = vld [vmem:[#allocation2 + $0x24] ss:$16 sps:$4 sm:$0xff]   ;;  %v408_v34 = vld [vmem:[#allocation2 + $0x8] ss:$16 sps:$4 sm:$0xff]   ;;  %v410_v43 = vld [vmem:[#allocation2 + $0xc] ss:$16 sps:$4 sm:$0xff]   ;;  %p499_p3 = scmp.lt.s32.totalorder %s375_s8, %s375_s8 }
  0x2f   :  { %v411_v39 = vld [vmem:[#allocation2 + $0x28] ss:$16 sps:$4 sm:$0xff]   ;;  %v413_v44 = vld [vmem:[#allocation2 + $0x2c] ss:$16 sps:$4 sm:$0xff]   ;;  %s494_s9 = scalar_lea.vmem %s375_s8, 128 }
  0x30   :  { %v178_v10 = vrot.slane %v390_v6, %v81_v5  ;;  %v185_v14 = vrot.slane %v392_v7, %v81_v5  ;;  %v192_v15 = vrot.slane %v393_v8, %v81_v5  ;;  %v199_v16 = vrot.slane %v395_v9, %v81_v5  ;;  %p495_p2 = scmp.ne.s32.totalorder %s375_s8, %s494_s9  ;;  %p500_p4 = scmp.lt.s32.totalorder %s494_s9, %s494_s9 }
  0x31   :  { %v214_v18 = vrot.slane %v396_v11, %v81_v5  ;;  %v228_v19 = vrot.slane %v399_v13, %v81_v5  ;;  %v221_v27 = vrot.slane %v398_v12, %v81_v5  ;;  %v235_v28 = vrot.slane %v401_v17, %v81_v5 }
  0x32   :  { %v200_v20 = vcombine.low %v178_v10, %v192_v15  ;;  %v201_v21 = vcombine.high %v178_v10, %v192_v15  ;;  %v202_v22 = vcombine.low %v185_v14, %v199_v16  ;;  %v203_v23 = vcombine.high %v185_v14, %v199_v16  ;;  %p501_p5 = por %p500_p4, %p499_p3 }
  0x33   :  { %v236_v32 = vcombine.low %v214_v18, %v228_v19  ;;  %v82_v36 = vrot.slane %v402_v24, %v81_v5  ;;  %v89_v37 = vrot.slane %v404_v25, %v81_v5  ;;  %v96_v38 = vrot.slane %v405_v26, %v81_v5 }
  0x34   :  { %v573_v29 = vsel %vm61_vm0, %v200_v20, 0.0  ;;  %v577_v30 = vsel %vm61_vm0, %v201_v21, 0.0  ;;  %v250_v33 = vsel %vm61_vm0, %v202_v22, 0.0  ;;  %v237_v40 = vcombine.high %v214_v18, %v228_v19  ;;  %p502_p6 = pnand %p501_p5, %p495_p2 }
  0x35   :  { %v268_v35 = vadd.f32 %v577_v30, %v573_v29  ;;  %v251_v41 = vsel %vm61_vm0, %v203_v23, 0.0  ;;  %v103_v42 = vrot.slane %v407_v31, %v81_v5  ;;  %v118_v45 = vrot.slane %v408_v34, %v81_v5 }
  0x36   :  { %v238_v46 = vcombine.low %v221_v27, %v235_v28  ;;  %v104_v48 = vcombine.low %v82_v36, %v96_v38  ;;  %v105_v49 = vcombine.high %v82_v36, %v96_v38  ;;  %v252_v50 = vsel %vm61_vm0, %v236_v32, 0.0 }
  0x37   :  { %v269_v47 = vadd.f32 %v268_v35, %v250_v33  ;;  %v106_v51 = vcombine.low %v89_v37, %v103_v42  ;;  %v107_v52 = vcombine.high %v89_v37, %v103_v42  ;;  %v132_v53 = vrot.slane %v411_v39, %v81_v5 }
  0x38   :  { %v239_v54 = vcombine.high %v221_v27, %v235_v28  ;;  %v152_v56 = vsel %vm61_vm0, %v104_v48, 0.0  ;;  %v153_v57 = vsel %vm61_vm0, %v105_v49, 0.0  ;;  %v253_v58 = vsel %vm61_vm0, %v237_v40, 0.0 }
  0x39   :  { %v270_v55 = vadd.f32 %v269_v47, %v251_v41  ;;  %v125_v59 = vrot.slane %v410_v43, %v81_v5  ;;  %v139_v60 = vrot.slane %v413_v44, %v81_v5  ;;  %v140_v61 = vcombine.low %v118_v45, %v132_v53 }
  0x3a   :  { %v154_v63 = vsel %vm61_vm0, %v106_v51, 0.0  ;;  %v256_v0 = vadd.f32 %v153_v57, %v152_v56  ;;  %v254_v1 = vsel %vm61_vm0, %v238_v46, 0.0  ;;  %v141_v2 = vcombine.high %v118_v45, %v132_v53 }
  0x3b   :  { %v271_v62 = vadd.f32 %v270_v55, %v252_v50  ;;  %v155_v4 = vsel %vm61_vm0, %v107_v52, 0.0  ;;  %v255_v8 = vsel %vm61_vm0, %v239_v54, 0.0  ;;  %v142_v9 = vcombine.low %v125_v59, %v139_v60 }
  0x3c   :  { %v257_v7 = vadd.f32 %v256_v0, %v154_v63  ;;  %v156_v5 = vsel %vm61_vm0, %v140_v61, 0.0  ;;  %v143_v12 = vcombine.high %v125_v59, %v139_v60  ;;  %v157_v13 = vsel %vm61_vm0, %v141_v2, 0.0 }
  0x3d   :  { %v272_v6 = vadd.f32 %v271_v62, %v253_v58  ;;  %v158_v16 = vsel %vm61_vm0, %v142_v9, 0.0 }
  0x3e   :  { %v258_v11 = vadd.f32 %v257_v7, %v155_v4  ;;  %v159_v18 = vsel %vm61_vm0, %v143_v12, 0.0 }
  0x3f   :  { %v273_v10 = vadd.f32 %v272_v6, %v254_v1 }
  0x40   :  { %v259_v15 = vadd.f32 %v258_v11, %v156_v5 }
  0x41   :  { %v274_v14 = vadd.f32 %v273_v10, %v255_v8 }
  0x42   :  { %v260_v17 = vadd.f32 %v259_v15, %v157_v13 }
  0x43   :  { %275 = vadd.xlane.f32.xlu0 %v274_v14 }
  0x44   :  { %v261_v19 = vadd.f32 %v260_v17, %v158_v16 }
  0x46   :  { %v262_v20 = vadd.f32 %v261_v19, %v159_v18 }
  0x48   :  { %263 = vadd.xlane.f32.xlu0 %v262_v20 }
  0xd0   :  { %v276_v21 = vpop.xlane.xlu0 %275 }
  0xd1   :  { %v277_v22 = vadd.f32 1e-08, %v276_v21 }
  0xd3   :  { %414 = vrcp.f32 %v277_v22 }
  0xd5   :  { %v264_v23 = vpop.xlane.xlu0 %263 }
  0xd6   :  { %v265_v24 = vadd.f32 1e-08, %v264_v23 }
  0xd8   :  { %416 = vrcp.f32 %v265_v24 }
  0xdd   :  { %v415_v25 = vpop.eup %414 }
  0xde   :  { %v288_v26 = vmul.f32 %v415_v25, %v573_v29  ;;  %v289_v27 = vmul.f32 %v415_v25, %v577_v30  ;;  %v290_v28 = vmul.f32 %v415_v25, %v250_v33  ;;  %v291_v31 = vmul.f32 %v415_v25, %v251_v41 }
  0xdf   :  { %v292_v32 = vmul.f32 %v415_v25, %v252_v50  ;;  %v293_v35 = vmul.f32 %v415_v25, %v253_v58  ;;  %v294_v36 = vmul.f32 %v415_v25, %v254_v1  ;;  %v295_v38 = vmul.f32 %v415_v25, %v255_v8 }
  0xe0   :  { %v296_v34 = vadd.f32 1e-08, %v288_v26  ;;  %v297_v3 = vadd.f32 1e-08, %v289_v27  ;;  %v298_v37 = vadd.f32 1e-08, %v290_v28 }
  0xe1   :  { %v299_v39 = vadd.f32 1e-08, %v291_v31  ;;  %v300_v40 = vadd.f32 1e-08, %v292_v32  ;;  %v301_v42 = vadd.f32 1e-08, %v293_v35 }
  0xe2   :  { %418 = vrcp.f32 %v296_v34  ;;  %v417_v43 = vpop.eup %416  ;;  %v302_v44 = vadd.f32 1e-08, %v294_v36  ;;  %v303_v29 = vadd.f32 1e-08, %v295_v38 }
  0xe3   :  { %420 = vrcp.f32 %v297_v3  ;;  %v280_v30 = vmul.f32 %v417_v43, %v152_v56  ;;  %v281_v33 = vmul.f32 %v417_v43, %v153_v57  ;;  %v282_v46 = vmul.f32 %v417_v43, %v154_v63 }
  0xe4   :  { %422 = vrcp.f32 %v298_v37  ;;  %v283_v48 = vmul.f32 %v417_v43, %v155_v4  ;;  %v284_v50 = vmul.f32 %v417_v43, %v156_v5  ;;  %v285_v53 = vmul.f32 %v417_v43, %v157_v13 }
  0xe5   :  { %424 = vrcp.f32 %v299_v39  ;;  %v286_v58 = vmul.f32 %v417_v43, %v158_v16  ;;  %v287_v60 = vmul.f32 %v417_v43, %v159_v18 }
  0xe6   :  { %426 = vrcp.f32 %v300_v40 }
  0xe7   :  { %428 = vrcp.f32 %v301_v42 }
  0xe8   :  { %430 = vrcp.f32 %v302_v44 }
  0xe9   :  { %432 = vrcp.f32 %v303_v29 }
  0xec   :  { %v419_v41 = vpop.eup %418 }
  0xed   :  { %v421_v45 = vpop.eup %420  ;;  %v305_v47 = vmul.f32 %v419_v41, %v280_v30 }
  0xee   :  { %v307_v49 = vmul.f32 %v421_v45, %v281_v33  ;;  %v423_v52 = vpop.eup %422 }
  0xef   :  { %v320_v51 = vadd.f32 1e-08, %v305_v47  ;;  %v425_v55 = vpop.eup %424  ;;  %v309_v59 = vmul.f32 %v423_v52, %v282_v46 }
  0xf0   :  { %v321_v54 = vadd.f32 1e-08, %v307_v49  ;;  %v427_v56 = vpop.eup %426  ;;  %v311_v57 = vmul.f32 %v425_v55, %v283_v48 }
  0xf1   :  { %434 = vlog2.f32 %v320_v51  ;;  %v429_v61 = vpop.eup %428  ;;  %v313_v62 = vmul.f32 %v427_v56, %v284_v50  ;;  %v322_v0 = vadd.f32 1e-08, %v309_v59 }
  0xf2   :  { %436 = vlog2.f32 %v321_v54  ;;  %v431_v63 = vpop.eup %430  ;;  %v315_v1 = vmul.f32 %v429_v61, %v285_v53  ;;  %v323_v2 = vadd.f32 1e-08, %v311_v57 }
  0xf3   :  { %v433_v4 = vpop.eup %432  ;;  %v317_v6 = vmul.f32 %v431_v63, %v286_v58  ;;  %v324_v7 = vadd.f32 1e-08, %v313_v62  ;;  %438 = vlog2.f32 %v322_v0 }
  0xf4   :  { %v319_v8 = vmul.f32 %v433_v4, %v287_v60  ;;  %v325_v9 = vadd.f32 1e-08, %v315_v1  ;;  %440 = vlog2.f32 %v323_v2 }
  0xf5   :  { %v326_v5 = vadd.f32 1e-08, %v317_v6  ;;  %442 = vlog2.f32 %v324_v7 }
  0xf6   :  { %v327_v10 = vadd.f32 1e-08, %v319_v8  ;;  %444 = vlog2.f32 %v325_v9 }
  0xf7   :  { %446 = vlog2.f32 %v326_v5 }
  0xf8   :  { %448 = vlog2.f32 %v327_v10 }
  0xfb   :  { %v435_v11 = vpop.eup %434 }
  0xfc   :  { %v437_v12 = vpop.eup %436  ;;  %v329_v13 = vmul.f32 0.6931472, %v435_v11 }
  0xfd   :  { %v331_v14 = vmul.f32 0.6931472, %v437_v12  ;;  %v439_v16 = vpop.eup %438 }
  0xfe   :  { %v344_v15 = vmul.f32 %v329_v13, %v280_v30  ;;  %v441_v18 = vpop.eup %440  ;;  %v333_v19 = vmul.f32 0.6931472, %v439_v16 }
  0xff   :  { %v345_v17 = vmul.f32 %v331_v14, %v281_v33  ;;  %v443_v20 = vpop.eup %442  ;;  %v335_v21 = vmul.f32 0.6931472, %v441_v18 }
 0x100   :  { %v445_v23 = vpop.eup %444  ;;  %v337_v24 = vmul.f32 0.6931472, %v443_v20  ;;  %v346_v25 = vmul.f32 %v333_v19, %v282_v46 }
 0x101   :  { %v360_v22 = vadd.f32 %v345_v17, %v344_v15  ;;  %v447_v26 = vpop.eup %446  ;;  %v339_v27 = vmul.f32 0.6931472, %v445_v23  ;;  %v347_v28 = vmul.f32 %v335_v21, %v283_v48 }
 0x102   :  { %v449_v32 = vpop.eup %448  ;;  %v341_v34 = vmul.f32 0.6931472, %v447_v26  ;;  %v348_v3 = vmul.f32 %v337_v24, %v284_v50 }
 0x103   :  { %v361_v31 = vadd.f32 %v360_v22, %v346_v25  ;;  %v343_v36 = vmul.f32 0.6931472, %v449_v32  ;;  %v349_v37 = vmul.f32 %v339_v27, %v285_v53 }
 0x104   :  { %v350_v39 = vmul.f32 %v341_v34, %v286_v58 }
 0x105   :  { %v362_v35 = vadd.f32 %v361_v31, %v347_v28  ;;  %v351_v42 = vmul.f32 %v343_v36, %v287_v60 }
 0x107   :  { %v363_v38 = vadd.f32 %v362_v35, %v348_v3 }
 0x109   :  { %v364_v40 = vadd.f32 %v363_v38, %v349_v37 }
 0x10b   :  { %v365_v43 = vadd.f32 %v364_v40, %v350_v39 }
 0x10d   :  { %v366_v44 = vadd.f32 %v365_v43, %v351_v42 }
 0x10f   :  { %367 = vst [vmem:[#allocation7] sm:$0xff] %v366_v44 }
 0x110   :  { %505 = shalt.err (!%p502_p6)
}
 0x111   :  { %s506_s12 = scalar_lea.hbm %s625_s2, 128 }
 0x112   :  { %p507_p7 = scmp.ne.s32.totalorder %s625_s2, %s506_s12  ;;  %p510_p8 = scmp.lt.u32.totalorder %s506_s12, %s625_s2 }
 0x114   :  { %p512_p9 = pnand %p510_p8, %p507_p7 }
 0x116   :  { %515 = shalt.err (!%p512_p9)
}
 0x117   :  { %377 = dma.vmem_to_hbm [thread:$0]  %s375_s8, 128, %s625_s2, [#allocation4]  }
 0x118   :  { %520 = dma.done.wait [#allocation4], 128  }
 0x119   :  { %521 = vsyncadd [#allocation4], 4294967168 }
 0x11a   :  { %381 = vsyncpa [#allocation3], 1 }
 0x11b   :  { %382 = vsyncpa [#allocation6], 1 }
 0x11c   :  { %383 = vsyncpa [#allocation4], 1 }

</bundles_post_ra>
